<compile_context>
chip_gen: v7x
topology: tpu7x:2x2x1
jax: 0.10.0
libtpu: 0.0.40
codegen_flags: <defaults>
</compile_context>

<pallas_src>
import math

import jax
import jax.numpy as jnp
from jax.experimental import pallas as pl
from jax.experimental.pallas import tpu as pltpu

LANE = 128  # TPU lane width; VMEM-resident hidden dims are padded up to this.


def _round_up(n, m):
    return ((n + m - 1) // m) * m


def qni_kernel(x_ref, w1_ref, wmid_ref, w5_ref, bmid_ref, b5_ref, o_ref):
    """Fused 5-layer MLP on one (tm, D_in) batch tile.

    Matmuls take bf16 operands and accumulate in f32 on the MXU; bias adds and
    activations run in f32 on the VPU/EUP.

    Zero-padding invariants (set up in prepare_params):
      * padded weight COLUMNS + padded bias lanes are zero -> padded activation
        lanes stay 0 through ReLU/Tanh,
      * padded weight ROWS are zero -> padded input lanes (in particular the
        sigmoid(0)=0.5 lanes after the quantum layer) never leak into real
        outputs.
    """
    x = x_ref[...].astype(jnp.bfloat16)          # (tm, 32) true contraction dim
    bmid = bmid_ref[...]                         # (4, 128) f32

    # encoder[0]: Linear(32, 64) -> ReLU   (K=32 real, N padded to 128)
    h1 = jnp.dot(x, w1_ref[...], preferred_element_type=jnp.float32) + bmid[0:1, :]
    h1 = jnp.maximum(h1, 0.0).astype(jnp.bfloat16)

    # encoder[2]: Linear(64, 16) -> Tanh
    enc = jnp.dot(h1, wmid_ref[0], preferred_element_type=jnp.float32) + bmid[1:2, :]
    enc = jnp.tanh(enc).astype(jnp.bfloat16)

    # quantum_processor: Linear(16, 16) -> Sigmoid (Dropout = identity in eval)
    qp = jnp.dot(enc, wmid_ref[1], preferred_element_type=jnp.float32) + bmid[2:3, :]
    qp = jax.nn.sigmoid(qp).astype(jnp.bfloat16)

    # decoder[0]: Linear(16, 64) -> ReLU
    h2 = jnp.dot(qp, wmid_ref[2], preferred_element_type=jnp.float32) + bmid[3:4, :]
    h2 = jnp.maximum(h2, 0.0).astype(jnp.bfloat16)

    # decoder[2]: Linear(64, 32)   (true N=32 -> narrow, masked vst is cheap here)
    o_ref[...] = jnp.dot(h2, w5_ref[...], preferred_element_type=jnp.float32) + b5_ref[...]


def quantum_neural_interface(x, prepared, *, block_rows=2048):
    """Batch-tiled pallas_call over the prepared (packed/padded) params.
    x: (B, D_in) f32. Returns (B, D_in) f32."""
    B, D_in = x.shape
    w1p, wmid, w5p, bmid, b5 = prepared
    assert w1p.shape[0] == D_in and w5p.shape[1] == D_in

    # Batch tile: multiple of 16 (bf16 sublane pack), large enough to amortize
    # per-step overhead, but keep >= 2 grid steps for big batches (v7x has 2 TCs
    # and splits the "parallel" batch axis across them).
    tm_cap = _round_up(block_rows, 16)
    tm = min(tm_cap, _round_up(max(pl.cdiv(B, 2), 16), 16))
    B_pad = _round_up(max(B, tm), tm)
    grid = (B_pad // tm,)

    # Pad only the batch dim (cheap, and only when B doesn't divide the tile).
    x_in = x if B_pad == B else jnp.pad(x, ((0, B_pad - B), (0, 0)))

    # Streamed tensors: lane-narrow (tm, D_in) blocks (last dim == full array dim).
    x_spec = pl.BlockSpec((tm, D_in), lambda i: (i, 0))
    out_spec = pl.BlockSpec((tm, D_in), lambda i: (i, 0))
    # VMEM-resident params: full array, constant index_map -> fetched once.
    w1_spec = pl.BlockSpec(w1p.shape, lambda i: (0, 0))
    wmid_spec = pl.BlockSpec(wmid.shape, lambda i: (0, 0, 0))
    w5_spec = pl.BlockSpec(w5p.shape, lambda i: (0, 0))
    bmid_spec = pl.BlockSpec(bmid.shape, lambda i: (0, 0))
    b5_spec = pl.BlockSpec(b5.shape, lambda i: (0, 0))

    param_bytes = int(w1p.size + wmid.size + w5p.size) * 2 + int(bmid.size + b5.size) * 4
    cost = pl.CostEstimate(
        flops=2 * B_pad * (D_in * LANE + 3 * LANE * LANE + LANE * D_in),
        transcendentals=2 * B_pad * LANE,          # tanh + sigmoid, 128-lane tiles
        bytes_accessed=B_pad * D_in * 4 * 2 + param_bytes,
    )

    out_pad = pl.pallas_call(
        qni_kernel,
        out_shape=jax.ShapeDtypeStruct((B_pad, D_in), jnp.float32),
        grid=grid,
        in_specs=[x_spec, w1_spec, wmid_spec, w5_spec, bmid_spec, b5_spec],
        out_specs=out_spec,
        compiler_params=pltpu.CompilerParams(
            dimension_semantics=("parallel",),
            vmem_limit_bytes=32 * 1024 * 1024,
        ),
        cost_estimate=cost,
    )(x_in, w1p, wmid, w5p, bmid, b5)

    return out_pad if B_pad == B else out_pad[:B]


def init_params(key, input_dim, quantum_dim, hidden_dim):
    """Deterministic PyTorch-style init: U(-1/sqrt(fan_in), +1/sqrt(fan_in)).
    Weights stored as (in_features, out_features); biases as (1, out_features).
    Returned unpadded, in float32."""
    layer_dims = [
        (input_dim, hidden_dim),     # encoder[0]
        (hidden_dim, quantum_dim),   # encoder[2]
        (quantum_dim, quantum_dim),  # quantum_processor[0]
        (quantum_dim, hidden_dim),   # decoder[0]
        (hidden_dim, input_dim),     # decoder[2]
    ]
    params = []
    keys = jax.random.split(key, 2 * len(layer_dims))
    for i, (fan_in, fan_out) in enumerate(layer_dims):
        bound = 1.0 / math.sqrt(fan_in)
        w = jax.random.uniform(keys[2 * i], (fan_in, fan_out),
                               minval=-bound, maxval=bound, dtype=jnp.float32)
        b = jax.random.uniform(keys[2 * i + 1], (1, fan_out),
                               minval=-bound, maxval=bound, dtype=jnp.float32)
        params.extend([w, b])
    return tuple(params)


def prepare_params(params, input_dim, quantum_dim, hidden_dim):
    """One-time layout prep for the VMEM-resident params.

    Returns:
      w1p  : (input_dim, 128) bf16  - true K=32, output lanes zero-padded.
      wmid : (3, 128, 128)    bf16  - [w2, w3, w4], both dims zero-padded.
      w5p  : (128, input_dim) bf16  - rows zero-padded, true N=input_dim.
      bmid : (4, 128)         f32   - [b1, b2, b3, b4], lanes zero-padded.
      b5   : (1, input_dim)   f32   - unpadded.
    """
    w1, b1, w2, b2, w3, b3, w4, b4, w5, b5 = params

    def pad2(w):
        r, c = w.shape
        return jnp.pad(w, ((0, LANE - r), (0, LANE - c)))

    def padb(b):
        return jnp.pad(b, ((0, 0), (0, LANE - b.shape[1])))

    w1p = jnp.pad(w1, ((0, 0), (0, LANE - hidden_dim))).astype(jnp.bfloat16)
    wmid = jnp.stack([pad2(w2), pad2(w3), pad2(w4)]).astype(jnp.bfloat16)
    w5p = jnp.pad(w5, ((0, LANE - hidden_dim), (0, 0))).astype(jnp.bfloat16)
    bmid = jnp.concatenate([padb(b1), padb(b2), padb(b3), padb(b4)],
                           axis=0).astype(jnp.float32)
    return w1p, wmid, w5p, bmid, b5.astype(jnp.float32)


def reference_forward(x, params):
    """Pure-JAX f32 reference of the eval-mode forward."""
    w1, b1, w2, b2, w3, b3, w4, b4, w5, b5 = params
    h1 = jnp.maximum(x @ w1 + b1, 0.0)
    enc = jnp.tanh(h1 @ w2 + b2)
    qp = jax.nn.sigmoid(enc @ w3 + b3)
    h2 = jnp.maximum(qp @ w4 + b4, 0.0)
    return h2 @ w5 + b5


if __name__ == "__main__":
    # Small shapes consistent with the module's forward: x is [batch, input_dim].
    batch = 2
    input_dim = 32
    quantum_dim = 16
    hidden_dim = 64

    key = jax.random.PRNGKey(0)
    key_x, key_p = jax.random.split(key)

    x = jax.random.normal(key_x, (batch, input_dim), dtype=jnp.float32)
    params = init_params(key_p, input_dim, quantum_dim, hidden_dim)
    prepared = prepare_params(params, input_dim, quantum_dim, hidden_dim)

    out = quantum_neural_interface(x, prepared)
    out = jax.block_until_ready(out)

    ref = reference_forward(x, params)
    assert out.shape == (batch, input_dim)
    # bf16 matmul operands (f32 accumulation) vs pure-f32 reference: loosened tol.
    assert jnp.allclose(out, ref, atol=3e-2, rtol=3e-2), (
        float(jnp.max(jnp.abs(out - ref))))

    print("KERNEL_OK")
</pallas_src>

<mosaic_0001>
module attributes {stable_mosaic.version = 11 : i64} {
  func.func @qni_kernel(%arg0: i32, %arg1: memref<16x32xf32, #tpu.memory_space<vmem>>, %arg2: memref<32x128xbf16, #tpu.memory_space<vmem>>, %arg3: memref<3x128x128xbf16, #tpu.memory_space<vmem>>, %arg4: memref<128x32xbf16, #tpu.memory_space<vmem>>, %arg5: memref<4x128xf32, #tpu.memory_space<vmem>>, %arg6: memref<1x32xf32, #tpu.memory_space<vmem>>, %arg7: memref<16x32xf32, #tpu.memory_space<vmem>>) attributes {dimension_semantics = [#tpu.dimension_semantics<parallel>], iteration_bounds = array<i64: 1>, scalar_prefetch = 0 : i64, scratch_operands = 0 : i64, tpu.core_type = #tpu.core_type<tc>, window_params = [{transform_indices = @transform_0, window_bounds = array<i64: 16, 32>}, {pipeline_mode = #tpu.pipeline_mode<synchronous>, transform_indices = @transform_1, window_bounds = array<i64: 32, 128>}, {pipeline_mode = #tpu.pipeline_mode<synchronous>, transform_indices = @transform_2, window_bounds = array<i64: 3, 128, 128>}, {pipeline_mode = #tpu.pipeline_mode<synchronous>, transform_indices = @transform_3, window_bounds = array<i64: 128, 32>}, {pipeline_mode = #tpu.pipeline_mode<synchronous>, transform_indices = @transform_4, window_bounds = array<i64: 4, 128>}, {pipeline_mode = #tpu.pipeline_mode<synchronous>, transform_indices = @transform_5, window_bounds = array<i64: 1, 32>}, {transform_indices = @transform_6, window_bounds = array<i64: 16, 32>}]} {
    %c0 = arith.constant 0 : index
    %c0_0 = arith.constant 0 : index
    %0 = vector.load %arg1[%c0, %c0_0] : memref<16x32xf32, #tpu.memory_space<vmem>>, vector<16x32xf32>
    %1 = arith.truncf %0 : vector<16x32xf32> to vector<16x32xbf16>
    %c0_1 = arith.constant 0 : index
    %c0_2 = arith.constant 0 : index
    %2 = vector.load %arg5[%c0_1, %c0_2] : memref<4x128xf32, #tpu.memory_space<vmem>>, vector<4x128xf32>
    %c0_3 = arith.constant 0 : index
    %c0_4 = arith.constant 0 : index
    %3 = vector.load %arg2[%c0_3, %c0_4] : memref<32x128xbf16, #tpu.memory_space<vmem>>, vector<32x128xbf16>
    %cst = arith.constant dense<0.000000e+00> : vector<16x128xf32>
    %4 = tpu.matmul %1, %3, %cst {dimension_numbers = #tpu.dot_dimension_numbers<[1], [0], [0], [1], [0, 0, 1, 1], [], []>} : vector<16x32xbf16>, vector<32x128xbf16>, vector<16x128xf32> -> vector<16x128xf32>
    %5 = vector.extract_strided_slice %2 {offsets = [0, 0], sizes = [1, 128], strides = [1, 1]} : vector<4x128xf32> to vector<1x128xf32>
    %6 = vector.broadcast %5 : vector<1x128xf32> to vector<16x128xf32>
    %7 = arith.addf %4, %6 : vector<16x128xf32>
    %cst_5 = arith.constant 0.000000e+00 : f32
    %8 = vector.broadcast %cst_5 : f32 to vector<16x128xf32>
    %9 = arith.maximumf %7, %8 : vector<16x128xf32>
    %10 = arith.truncf %9 : vector<16x128xf32> to vector<16x128xbf16>
    %c0_6 = arith.constant 0 : index
    %c0_7 = arith.constant 0 : index
    %c0_8 = arith.constant 0 : index
    %11 = vector.load %arg3[%c0_6, %c0_7, %c0_8] : memref<3x128x128xbf16, #tpu.memory_space<vmem>>, vector<1x128x128xbf16>
    %12 = vector.shape_cast %11 : vector<1x128x128xbf16> to vector<128x128xbf16>
    %cst_9 = arith.constant dense<0.000000e+00> : vector<16x128xf32>
    %13 = tpu.matmul %10, %12, %cst_9 {dimension_numbers = #tpu.dot_dimension_numbers<[1], [0], [0], [1], [0, 0, 1, 1], [], []>} : vector<16x128xbf16>, vector<128x128xbf16>, vector<16x128xf32> -> vector<16x128xf32>
    %14 = vector.extract_strided_slice %2 {offsets = [1, 0], sizes = [1, 128], strides = [1, 1]} : vector<4x128xf32> to vector<1x128xf32>
    %15 = vector.broadcast %14 : vector<1x128xf32> to vector<16x128xf32>
    %16 = arith.addf %13, %15 : vector<16x128xf32>
    %17 = math.tanh %16 : vector<16x128xf32>
    %18 = arith.truncf %17 : vector<16x128xf32> to vector<16x128xbf16>
    %c1 = arith.constant 1 : index
    %c0_10 = arith.constant 0 : index
    %c0_11 = arith.constant 0 : index
    %19 = vector.load %arg3[%c1, %c0_10, %c0_11] : memref<3x128x128xbf16, #tpu.memory_space<vmem>>, vector<1x128x128xbf16>
    %20 = vector.shape_cast %19 : vector<1x128x128xbf16> to vector<128x128xbf16>
    %cst_12 = arith.constant dense<0.000000e+00> : vector<16x128xf32>
    %21 = tpu.matmul %18, %20, %cst_12 {dimension_numbers = #tpu.dot_dimension_numbers<[1], [0], [0], [1], [0, 0, 1, 1], [], []>} : vector<16x128xbf16>, vector<128x128xbf16>, vector<16x128xf32> -> vector<16x128xf32>
    %22 = vector.extract_strided_slice %2 {offsets = [2, 0], sizes = [1, 128], strides = [1, 1]} : vector<4x128xf32> to vector<1x128xf32>
    %23 = vector.broadcast %22 : vector<1x128xf32> to vector<16x128xf32>
    %24 = arith.addf %21, %23 : vector<16x128xf32>
    %25 = arith.negf %24 : vector<16x128xf32>
    %26 = math.exp %25 : vector<16x128xf32>
    %cst_13 = arith.constant 1.000000e+00 : f32
    %27 = vector.broadcast %cst_13 : f32 to vector<16x128xf32>
    %28 = arith.addf %27, %26 : vector<16x128xf32>
    %29 = arith.divf %27, %28 : vector<16x128xf32>
    %30 = arith.truncf %29 : vector<16x128xf32> to vector<16x128xbf16>
    %c2 = arith.constant 2 : index
    %c0_14 = arith.constant 0 : index
    %c0_15 = arith.constant 0 : index
    %31 = vector.load %arg3[%c2, %c0_14, %c0_15] : memref<3x128x128xbf16, #tpu.memory_space<vmem>>, vector<1x128x128xbf16>
    %32 = vector.shape_cast %31 : vector<1x128x128xbf16> to vector<128x128xbf16>
    %cst_16 = arith.constant dense<0.000000e+00> : vector<16x128xf32>
    %33 = tpu.matmul %30, %32, %cst_16 {dimension_numbers = #tpu.dot_dimension_numbers<[1], [0], [0], [1], [0, 0, 1, 1], [], []>} : vector<16x128xbf16>, vector<128x128xbf16>, vector<16x128xf32> -> vector<16x128xf32>
    %34 = vector.extract_strided_slice %2 {offsets = [3, 0], sizes = [1, 128], strides = [1, 1]} : vector<4x128xf32> to vector<1x128xf32>
    %35 = vector.broadcast %34 : vector<1x128xf32> to vector<16x128xf32>
    %36 = arith.addf %33, %35 : vector<16x128xf32>
    %cst_17 = arith.constant 0.000000e+00 : f32
    %37 = vector.broadcast %cst_17 : f32 to vector<16x128xf32>
    %38 = arith.maximumf %36, %37 : vector<16x128xf32>
    %39 = arith.truncf %38 : vector<16x128xf32> to vector<16x128xbf16>
    %c0_18 = arith.constant 0 : index
    %c0_19 = arith.constant 0 : index
    %40 = vector.load %arg4[%c0_18, %c0_19] : memref<128x32xbf16, #tpu.memory_space<vmem>>, vector<128x32xbf16>
    %cst_20 = arith.constant dense<0.000000e+00> : vector<16x32xf32>
    %41 = tpu.matmul %39, %40, %cst_20 {dimension_numbers = #tpu.dot_dimension_numbers<[1], [0], [0], [1], [0, 0, 1, 1], [], []>} : vector<16x128xbf16>, vector<128x32xbf16>, vector<16x32xf32> -> vector<16x32xf32>
    %c0_21 = arith.constant 0 : index
    %c0_22 = arith.constant 0 : index
    %42 = vector.load %arg6[%c0_21, %c0_22] : memref<1x32xf32, #tpu.memory_space<vmem>>, vector<1x32xf32>
    %43 = vector.broadcast %42 : vector<1x32xf32> to vector<16x32xf32>
    %44 = arith.addf %41, %43 : vector<16x32xf32>
    %c0_23 = arith.constant 0 : index
    %c0_24 = arith.constant 0 : index
    %45 = vector.load %arg7[%c0_23, %c0_24] : memref<16x32xf32, #tpu.memory_space<vmem>>, vector<16x32xf32>
    tpu.vector_store %arg7[%c0_23, %c0_24], %44 {strides = array<i32>} : memref<16x32xf32, #tpu.memory_space<vmem>>, vector<16x32xf32>,
    return
  }
  func.func @transform_0(%arg0: i32) -> (i32, i32) {
    %c0_i32 = arith.constant 0 : i32
    %c0_i32_0 = arith.constant 0 : i32
    return %arg0, %c0_i32 : i32, i32
  }
  func.func @transform_1(%arg0: i32) -> (i32, i32) {
    %c0_i32 = arith.constant 0 : i32
    %c0_i32_0 = arith.constant 0 : i32
    %c0_i32_1 = arith.constant 0 : i32
    return %c0_i32, %c0_i32_0 : i32, i32
  }
  func.func @transform_2(%arg0: i32) -> (i32, i32, i32) {
    %c0_i32 = arith.constant 0 : i32
    %c0_i32_0 = arith.constant 0 : i32
    %c0_i32_1 = arith.constant 0 : i32
    %c0_i32_2 = arith.constant 0 : i32
    return %c0_i32, %c0_i32_0, %c0_i32_1 : i32, i32, i32
  }
  func.func @transform_3(%arg0: i32) -> (i32, i32) {
    %c0_i32 = arith.constant 0 : i32
    %c0_i32_0 = arith.constant 0 : i32
    %c0_i32_1 = arith.constant 0 : i32
    return %c0_i32, %c0_i32_0 : i32, i32
  }
  func.func @transform_4(%arg0: i32) -> (i32, i32) {
    %c0_i32 = arith.constant 0 : i32
    %c0_i32_0 = arith.constant 0 : i32
    %c0_i32_1 = arith.constant 0 : i32
    return %c0_i32, %c0_i32_0 : i32, i32
  }
  func.func @transform_5(%arg0: i32) -> (i32, i32) {
    %c0_i32 = arith.constant 0 : i32
    %c0_i32_0 = arith.constant 0 : i32
    %c0_i32_1 = arith.constant 0 : i32
    return %c0_i32, %c0_i32_0 : i32, i32
  }
  func.func @transform_6(%arg0: i32) -> (i32, i32) {
    %c0_i32 = arith.constant 0 : i32
    %c0_i32_0 = arith.constant 0 : i32
    return %arg0, %c0_i32 : i32, i32
  }
}

</mosaic_0001>

<bundles_post_ra>
// kernel: tpu_custom_call.1
= control target key start
LH: loop header
LB: loop body
LE: loop exit
PB: predicated region body
PF: predicated region fallthrough
CT: control target
= control target key end

     0   :  { %11 = vsyncpa [#allocation3], 0  ;;  %s1025_s0 = inlined_call_operand.vmem [shape: f32[16,32], index: 0, kind: input, shape index: {}]   ;;  %s1026_s1 = inlined_call_operand.vmem [shape: bf16[32,128], index: 1, kind: input, shape index: {}]   ;;  %s1027_s2 = inlined_call_operand.hbm [shape: bf16[3,128,128], index: 2, kind: input, shape index: {}]   ;;  %s1028_s3 = inlined_call_operand.vmem [shape: bf16[128,32], index: 3, kind: input, shape index: {}]   ;;  %s1029_s4 = inlined_call_operand.vmem [shape: f32[4,128], index: 4, kind: input, shape index: {}]   ;;  %s1030_s5 = inlined_call_operand.vmem [shape: f32[1,32], index: 5, kind: input, shape index: {}]   ;;  %s1031_s6 = inlined_call_operand.hbm [shape: f32[16,32], index: 6, kind: output, shape index: {}]  }
   0x1   :  { %12 = vsyncpa [#allocation4], 0  ;;  %s857_s21 = smov [#allocation2]   ;;  %s809_s25 = scalar_lea.hbm %s1027_s2, 3072 }
   0x2   :  { %s22_s22 = sshll.u32 %s857_s21, 4  ;;  %p810_p0 = scmp.ne.s32.totalorder %s1027_s2, %s809_s25  ;;  %s23_s22 = int_to_ptr.vmem [resolvable:$true] %s22_s22 }
   0x3   :  { %p813_p1 = scmp.lt.u32.totalorder %s809_s25, %s1027_s2 }
   0x5   :  { %p815_p2 = pnand %p813_p1, %p810_p0 }
   0x7   :  { %818 = shalt.err (!%p815_p2)
}
   0x8   :  { %s819_s30 = scalar_lea.vmem %s23_s22, 3072  ;;  %p824_p4 = scmp.lt.s32.totalorder %s23_s22, %s23_s22 }
   0x9   :  { %p820_p3 = scmp.ne.s32.totalorder %s23_s22, %s819_s30  ;;  %p825_p5 = scmp.lt.s32.totalorder %s819_s30, %s819_s30 }
   0xb   :  { %p826_p6 = por %p825_p5, %p824_p4 }
   0xd   :  { %p827_p7 = pnand %p826_p6, %p820_p3 }
   0xf   :  { %830 = shalt.err (!%p827_p7)
}
  0x10   :  { %s858_s7 = smov 64   ;;  %s859_s8 = smov 4  }
  0x11   :  { %28 = dma.hbm_to_vmem [thread:$0]  %s1027_s2, 3072, %s23_s22, [#allocation3], %s858_s7, %s858_s7, %s859_s8  }
  0x12   :  { %853 = dma.done.wait [#allocation3], 3072  }
  0x13   :  { %854 = vsyncadd [#allocation3], 4294964224  ;;  %v860_v0 = vmov 0.0   ;;  %vm861_vm0 = vmmov 0   ;;  %v763_v1 = vld [vmem:[%s1026_s1] sm:$0xff]   ;;  %v764_v2 = vld [vmem:[%s1026_s1 + $0x8] sm:$0xff]   ;;  %v47_v18 = vlaneseq }
  0x14   :  { %667 = vmatprep.subr.bf16.mxu0 %v860_v0  ;;  %671 = vmatprep.mubr.msk.bf16.mxu0 %vm861_vm0, %v860_v0  ;;  %v39_v3 = vld [vmem:[%s1025_s0] sm:$0xff]  ;;  %v40_v4 = vld [vmem:[%s1025_s0 + $0x8] sm:$0xff]  ;;  %vm63_vm1 = vcmask 261120   ;;  %v767_v8 = vld [vmem:[#allocation2 + $0x10] sm:$0xff]  }
  0x15   :  { %675 = vmatprep.subr.bf16.mxu1 %v860_v0  ;;  %691 = vmatprep.mubr.msk.bf16.mxu1 %vm861_vm0, %v860_v0  ;;  %v765_v5 = vld [vmem:[#allocation2] sm:$0xff]   ;;  %v41_v6 = vpack.c.bf16 %v40_v4, %v39_v3  ;;  %v766_v7 = vld [vmem:[#allocation2 + $0x8] sm:$0xff]   ;;  %v768_v9 = vld [vmem:[#allocation2 + $0x18] sm:$0xff]   ;;  %v947_v19 = vshrl.u32 %v47_v18, 7 }
  0x16   :  { %668 = vmatpush3.bf16.msra.mxu0 %v763_v1  ;;  %676 = vmatpush3.bf16.msra.mxu1 %v765_v5  ;;  %v769_v10 = vld [vmem:[#allocation2 + $0x20] sm:$0xff]   ;;  %v770_v11 = vld [vmem:[#allocation2 + $0x28] sm:$0xff]   ;;  %v771_v12 = vld [vmem:[#allocation2 + $0x30] sm:$0xff]  }
  0x17   :  { %669 = vmatprep.subr.bf16.mxu0 %v860_v0  ;;  %677 = vmatprep.subr.bf16.mxu1 %v860_v0  ;;  %v772_v13 = vld [vmem:[#allocation2 + $0x38] sm:$0xff]   ;;  %v773_v14 = vld [vmem:[#allocation2 + $0x40] sm:$0xff]   ;;  %v774_v15 = vld [vmem:[#allocation2 + $0x48] sm:$0xff]   ;;  %v49_v20 = vsub.s32 0, %v947_v19  ;;  %v129_v36 = vsub.s32 1, %v947_v19  ;;  %v242_v61 = vsub.s32 2, %v947_v19 }
  0x18   :  { %v775_v16 = vld [vmem:[#allocation2 + $0x50] sm:$0xff]   ;;  %v776_v17 = vld [vmem:[#allocation2 + $0x58] sm:$0xff]   ;;  %v953_v21 = vld [vmem:[%s1029_s4] sm:$0xf] }
  0x19   :  { %v50_v22 = vrot.slane %v953_v21, %v49_v20  ;;  %v777_v32 = vld [vmem:[#allocation2 + $0x60] sm:$0xff]   ;;  %v778_v33 = vld [vmem:[#allocation2 + $0x68] sm:$0xff]   ;;  %v779_v34 = vld [vmem:[#allocation2 + $0x70] sm:$0xff]   ;;  %v130_v37 = vrot.slane %v953_v21, %v129_v36  ;;  %v243_v62 = vrot.slane %v953_v21, %v242_v61 }
  0x1a   :  { %670 = vmatpush3.bf16.msra.mxu0 %v764_v2  ;;  %678 = vmatpush3.bf16.msra.mxu1 %v766_v7  ;;  %v780_v35 = vld [vmem:[#allocation2 + $0x78] sm:$0xff]   ;;  %v781_v47 = vld [vmem:[#allocation2 + $0x80] sm:$0xff]   ;;  %v782_v48 = vld [vmem:[#allocation2 + $0x88] sm:$0xff]  }
  0x1b   :  { %695 = vmatprep.subr.bf16.mxu0 %v860_v0  ;;  %679 = vmatprep.subr.bf16.mxu1 %v860_v0  ;;  %v783_v49 = vld [vmem:[#allocation2 + $0x90] sm:$0xff]   ;;  %v784_v50 = vld [vmem:[#allocation2 + $0x98] sm:$0xff]   ;;  %v785_v51 = vld [vmem:[#allocation2 + $0xa0] sm:$0xff]  }
  0x1c   :  { %v786_v52 = vld [vmem:[#allocation2 + $0xa8] sm:$0xff]   ;;  %v787_v53 = vld [vmem:[#allocation2 + $0xb0] sm:$0xff]   ;;  %v788_v54 = vld [vmem:[#allocation2 + $0xb8] sm:$0xff]  }
  0x1d   :  { %672 = vmatmul.mubr.msk.bf16.vlgmr.msra.gmra.mrb[0].mxu0 %vm63_vm1, %v41_v6  ;;  %v789_v55 = vld [vmem:[%s1028_s3] sm:$0xff]   ;;  %v790_v56 = vld [vmem:[%s1028_s3 + $0x8] sm:$0xff]   ;;  %v791_v57 = vld [vmem:[%s1028_s3 + $0x10] sm:$0xff]  }
  0x1e   :  { %711 = vmatprep.mubr.msk.bf16.mxu0 %vm861_vm0, %v860_v0  ;;  %680 = vmatpush3.bf16.msra.mxu1 %v767_v8  ;;  %v792_v58 = vld [vmem:[%s1028_s3 + $0x18] sm:$0xff]   ;;  %v793_v59 = vld [vmem:[%s1028_s3 + $0x20] sm:$0xff]   ;;  %v794_v60 = vld [vmem:[%s1028_s3 + $0x28] sm:$0xff]  }
  0x1f   :  { %681 = vmatprep.subr.bf16.mxu1 %v860_v0  ;;  %696 = vmatpush3.bf16.msra.mxu0 %v773_v14 }
  0x20   :  { %697 = vmatprep.subr.bf16.mxu0 %v860_v0 }
  0x22   :  { %682 = vmatpush3.bf16.msra.mxu1 %v768_v9 }
  0x23   :  { %683 = vmatprep.subr.bf16.mxu1 %v860_v0  ;;  %698 = vmatpush3.bf16.msra.mxu0 %v774_v15  ;;  %v795_v15 = vld [vmem:[%s1028_s3 + $0x30] sm:$0xff]  }
  0x24   :  { %699 = vmatprep.subr.bf16.mxu0 %v860_v0 }
  0x26   :  { %684 = vmatpush3.bf16.msra.mxu1 %v769_v10 }
  0x27   :  { %685 = vmatprep.subr.bf16.mxu1 %v860_v0  ;;  %700 = vmatpush3.bf16.msra.mxu0 %v775_v16  ;;  %v796_v16 = vld [vmem:[%s1028_s3 + $0x38] sm:$0xff]   ;;  %s862_s3 = smov [#allocation5]  }
  0x28   :  { %701 = vmatprep.subr.bf16.mxu0 %v860_v0  ;;  %s578_s11 = sshll.u32 %s862_s3, 4  ;;  %s579_s11 = int_to_ptr.vmem [resolvable:$true] %s578_s11 }
  0x29   :  { %s831_s12 = scalar_lea.vmem %s579_s11, 256  ;;  %p836_p9 = scmp.lt.s32.totalorder %s579_s11, %s579_s11 }
  0x2a   :  { %686 = vmatpush3.bf16.msra.mxu1 %v770_v11  ;;  %p832_p8 = scmp.ne.s32.totalorder %s579_s11, %s831_s12  ;;  %p837_p10 = scmp.lt.s32.totalorder %s831_s12, %s831_s12 }
  0x2b   :  { %687 = vmatprep.subr.bf16.mxu1 %v860_v0  ;;  %702 = vmatpush3.bf16.msra.mxu0 %v776_v17  ;;  %v365_v17 = vsub.s32 3, %v947_v19 }
  0x2c   :  { %703 = vmatprep.subr.bf16.mxu0 %v860_v0  ;;  %p838_p11 = por %p837_p10, %p836_p9 }
  0x2d   :  { %v366_v18 = vrot.slane %v953_v21, %v365_v17 }
  0x2e   :  { %688 = vmatpush3.bf16.msra.mxu1 %v771_v12  ;;  %p839_p12 = pnand %p838_p11, %p832_p8 }
  0x2f   :  { %689 = vmatprep.subr.bf16.mxu1 %v860_v0  ;;  %704 = vmatpush3.bf16.msra.mxu0 %v777_v32 }
  0x30   :  { %705 = vmatprep.subr.bf16.mxu0 %v860_v0 }
  0x32   :  { %690 = vmatpush3.bf16.msra.mxu1 %v772_v13 }
  0x33   :  { %715 = vmatprep.subr.bf16.mxu1 %v860_v0  ;;  %706 = vmatpush3.bf16.msra.mxu0 %v778_v33 }
  0x34   :  { %707 = vmatprep.subr.bf16.mxu0 %v860_v0 }
  0x37   :  { %708 = vmatpush3.bf16.msra.mxu0 %v779_v34 }
  0x38   :  { %709 = vmatprep.subr.bf16.mxu0 %v860_v0 }
  0x3b   :  { %710 = vmatpush3.bf16.msra.mxu0 %v780_v35 }
  0x3c   :  { %735 = vmatprep.subr.bf16.mxu0 %v860_v0 }
  0xf0   :  { %v101_v23 = vpop.f32.mrb[0].mxu0 }
  0xf1   :  { %v102_v24 = vadd.f32 %v101_v23, %v50_v22  ;;  %v673_v25 = vpop.f32.mrb[1].mxu0 }
  0xf2   :  { %v104_v26 = vpop.f32.mrb[2].mxu0 }
  0xf3   :  { %v105_v27 = vadd.f32 %v104_v26, %v50_v22  ;;  %v674_v28 = vpop.f32.mrb[3].mxu0  ;;  %v108_v29 = vmax.f32 %v102_v24, 0.0 }
  0xf5   :  { %v109_v30 = vmax.f32 %v105_v27, 0.0 }
  0xf7   :  { %v110_v31 = vpack.c.bf16 %v109_v30, %v108_v29 }
  0xf9   :  { %692 = vmatmul.mubr.bf16.vlgmr.msra.gmra.mrb[0].mxu1 %v110_v31 }
  0xfa   :  { %731 = vmatprep.mubr.msk.bf16.mxu1 %vm861_vm0, %v860_v0  ;;  %716 = vmatpush3.bf16.msra.mxu1 %v781_v47 }
  0xfb   :  { %717 = vmatprep.subr.bf16.mxu1 %v860_v0 }
  0xfe   :  { %718 = vmatpush3.bf16.msra.mxu1 %v782_v48 }
  0xff   :  { %719 = vmatprep.subr.bf16.mxu1 %v860_v0 }
 0x102   :  { %720 = vmatpush3.bf16.msra.mxu1 %v783_v49 }
 0x103   :  { %721 = vmatprep.subr.bf16.mxu1 %v860_v0 }
 0x106   :  { %722 = vmatpush3.bf16.msra.mxu1 %v784_v50 }
 0x107   :  { %723 = vmatprep.subr.bf16.mxu1 %v860_v0 }
 0x10a   :  { %724 = vmatpush3.bf16.msra.mxu1 %v785_v51 }
 0x10b   :  { %725 = vmatprep.subr.bf16.mxu1 %v860_v0 }
 0x10e   :  { %726 = vmatpush3.bf16.msra.mxu1 %v786_v52 }
 0x10f   :  { %727 = vmatprep.subr.bf16.mxu1 %v860_v0 }
 0x112   :  { %728 = vmatpush3.bf16.msra.mxu1 %v787_v53 }
 0x113   :  { %729 = vmatprep.subr.bf16.mxu1 %v860_v0 }
 0x116   :  { %730 = vmatpush3.bf16.msra.mxu1 %v788_v54 }
 0x1cc   :  { %v213_v38 = vpop.f32.mrb[0].mxu1 }
 0x1cd   :  { %v214_v39 = vadd.f32 %v213_v38, %v130_v37  ;;  %v693_v40 = vpop.f32.mrb[1].mxu1 }
 0x1ce   :  { %v216_v41 = vpop.f32.mrb[2].mxu1 }
 0x1cf   :  { %v217_v42 = vadd.f32 %v216_v41, %v130_v37  ;;  %v694_v43 = vpop.f32.mrb[3].mxu1  ;;  %797 = vtanh.f32 %v214_v39 }
 0x1d1   :  { %799 = vtanh.f32 %v217_v42 }
 0x1d9   :  { %v798_v44 = vpop.eup %797 }
 0x1db   :  { %v800_v45 = vpop.eup %799 }
 0x1dc   :  { %v222_v46 = vpack.c.bf16 %v800_v45, %v798_v44 }
 0x1de   :  { %712 = vmatmul.mubr.bf16.vlgmr.msra.gmra.mrb[4].mxu0 %v222_v46 }
 0x1df   :  { %751 = vmatprep.mubr.msk.bf16.mxu0 %vm861_vm0, %v860_v0  ;;  %736 = vmatpush3.bf16.msra.mxu0 %v789_v55 }
 0x1e0   :  { %737 = vmatprep.subr.bf16.mxu0 %v860_v0 }
 0x1e3   :  { %738 = vmatpush3.bf16.msra.mxu0 %v790_v56 }
 0x1e4   :  { %739 = vmatprep.subr.bf16.mxu0 %v860_v0 }
 0x1e7   :  { %740 = vmatpush3.bf16.msra.mxu0 %v791_v57 }
 0x1e8   :  { %741 = vmatprep.subr.bf16.mxu0 %v860_v0 }
 0x1eb   :  { %742 = vmatpush3.bf16.msra.mxu0 %v792_v58 }
 0x1ec   :  { %743 = vmatprep.subr.bf16.mxu0 %v860_v0 }
 0x1ef   :  { %744 = vmatpush3.bf16.msra.mxu0 %v793_v59 }
 0x1f0   :  { %745 = vmatprep.subr.bf16.mxu0 %v860_v0 }
 0x1f3   :  { %746 = vmatpush3.bf16.msra.mxu0 %v794_v60 }
 0x1f4   :  { %747 = vmatprep.subr.bf16.mxu0 %v860_v0 }
 0x1f7   :  { %748 = vmatpush3.bf16.msra.mxu0 %v795_v15 }
 0x1f8   :  { %749 = vmatprep.subr.bf16.mxu0 %v860_v0  ;;  %v619_v0 = vld [vmem:[%s1030_s5] ss:$0 sm:$0xff] }
 0x1fb   :  { %750 = vmatpush3.bf16.msra.mxu0 %v796_v16 }
 0x2b1   :  { %v326_v63 = vpop.f32.mrb[4].mxu0 }
 0x2b2   :  { %v327_v1 = vadd.f32 %v326_v63, %v243_v62  ;;  %v713_v2 = vpop.f32.mrb[5].mxu0 }
 0x2b3   :  { %v329_v3 = vpop.f32.mrb[6].mxu0 }
 0x2b4   :  { %v609_v4 = vmul.f32 -1.442695, %v327_v1  ;;  %v330_v5 = vadd.f32 %v329_v3, %v243_v62  ;;  %v714_v6 = vpop.f32.mrb[7].mxu0 }
 0x2b6   :  { %801 = vpow2.f32 %v609_v4  ;;  %v610_v7 = vmul.f32 -1.442695, %v330_v5 }
 0x2b8   :  { %803 = vpow2.f32 %v610_v7 }
 0x2c0   :  { %v802_v8 = vpop.eup %801 }
 0x2c1   :  { %v339_v9 = vadd.f32 1.0, %v802_v8 }
 0x2c2   :  { %v804_v10 = vpop.eup %803 }
 0x2c3   :  { %v340_v11 = vadd.f32 1.0, %v804_v10  ;;  %805 = vrcp.f32 %v339_v9 }
 0x2c5   :  { %807 = vrcp.f32 %v340_v11 }
 0x2cd   :  { %v806_v12 = vpop.eup %805 }
 0x2cf   :  { %v808_v13 = vpop.eup %807 }
 0x2d0   :  { %v345_v14 = vpack.c.bf16 %v808_v13, %v806_v12 }
 0x2d2   :  { %732 = vmatmul.mubr.bf16.vlgmr.msra.gmra.mrb[4].mxu1 %v345_v14 }
 0x3a5   :  { %v449_v20 = vpop.f32.mrb[4].mxu1 }
 0x3a6   :  { %v450_v22 = vadd.f32 %v449_v20, %v366_v18  ;;  %v733_v23 = vpop.f32.mrb[5].mxu1 }
 0x3a7   :  { %v452_v24 = vpop.f32.mrb[6].mxu1 }
 0x3a8   :  { %v453_v25 = vadd.f32 %v452_v24, %v366_v18  ;;  %v734_v26 = vpop.f32.mrb[7].mxu1  ;;  %v456_v27 = vmax.f32 %v450_v22, 0.0 }
 0x3aa   :  { %v457_v28 = vmax.f32 %v453_v25, 0.0 }
 0x3ac   :  { %v458_v29 = vpack.c.bf16 %v457_v28, %v456_v27 }
 0x3ae   :  { %752 = vmatmul.mubr.bf16.vlgmr.msra.gmra.mrb[8].mxu0 %v458_v29 }
 0x481   :  { %v564_v30 = vpop.f32.mrb[8].mxu0 }
 0x482   :  { %v565_v19 = vadd.f32 %v619_v0, %v564_v30  ;;  %v753_v31 = vpop.f32.mrb[9].mxu0 }
 0x483   :  { %v567_v21 = vpop.f32.mrb[10].mxu0 }
 0x484   :  { %571 = vst.msk [vmem:[#allocation5] sm:$0xff] %vm63_vm1, %v565_v19  ;;  %v568_v32 = vadd.f32 %v619_v0, %v567_v21  ;;  %v754_v33 = vpop.f32.mrb[11].mxu0 }
 0x486   :  { %572 = vst.msk [vmem:[#allocation5 + $0x8] sm:$0xff] %vm63_vm1, %v568_v32 }
 0x487   :  { %842 = shalt.err (!%p839_p12)
}
 0x488   :  { %s843_s2 = scalar_lea.hbm %s1031_s6, 256 }
 0x489   :  { %p844_p13 = scmp.ne.s32.totalorder %s1031_s6, %s843_s2  ;;  %p847_p0 = scmp.lt.u32.totalorder %s843_s2, %s1031_s6 }
 0x48b   :  { %p849_p1 = pnand %p847_p0, %p844_p13 }
 0x48d   :  { %852 = shalt.err (!%p849_p1)
}
 0x48e   :  { %s863_s0 = smov 128   ;;  %s864_s1 = smov 8  }
 0x48f   :  { %584 = dma.vmem_to_hbm [thread:$0]  %s579_s11, 256, %s1031_s6, [#allocation4], %s863_s0, %s863_s0, %s864_s1  }
 0x490   :  { %855 = dma.done.wait [#allocation4], 256  }
 0x491   :  { %856 = vsyncadd [#allocation4], 4294967040 }
 0x492   :  { %588 = vsyncpa [#allocation3], 1 }
 0x493   :  { %589 = vsyncpa [#allocation4], 1 }

</bundles_post_ra>
